<compile_context>
chip_gen: v6e
topology: v6e:2x2x1
jax: 0.10.0
libtpu: 0.0.40
codegen_flags: <defaults>
</compile_context>

<pallas_src>
import jax
import jax.numpy as jnp
from jax.experimental import pallas as pl
from jax.experimental.pallas import tpu as pltpu


def discriminator_kernel(x_ref, w1_ref, b1_ref, w2_ref, b2_ref, w3_ref, b3_ref, o_ref):
    # x: (in_dim, TILE_B) -- batch on lanes, feature on sublanes.
    x = x_ref[...]

    # Layer 1: (25, in_dim) @ (in_dim, TILE_B) -> (25, TILE_B), + bias (25, 1), ReLU.
    h1 = jnp.dot(w1_ref[...], x, preferred_element_type=jnp.float32) + b1_ref[...]
    h1 = jnp.maximum(h1, 0.0)

    # Layer 2: (45, 25) @ (25, TILE_B) -> (45, TILE_B), + bias (45, 1), ReLU.
    h2 = jnp.dot(w2_ref[...], h1, preferred_element_type=jnp.float32) + b2_ref[...]
    h2 = jnp.maximum(h2, 0.0)

    # Layer 3: (1, 45) @ (45, TILE_B) -> (1, TILE_B), + bias (1, 1), Sigmoid.
    z = jnp.dot(w3_ref[...], h2, preferred_element_type=jnp.float32) + b3_ref[...]
    o_ref[...] = jax.nn.sigmoid(z).astype(o_ref.dtype)          # (1, TILE_B) lane-dense


def _round_up(n, m):
    return ((n + m - 1) // m) * m


def discriminator_forward(x, params, tile_b=8192):
    """x: (B, input_dim) float32.  params as produced by init_params. Returns (B, 1)."""
    w1, b1, w2, b2, w3, b3 = params
    w1 = jnp.asarray(w1)                     # (25, in_dim) -- native (out, in) layout
    w2 = jnp.asarray(w2)                     # (45, 25)
    w3 = jnp.asarray(w3)                     # (1, 45)
    b1c = jnp.asarray(b1).reshape(-1, 1)     # (25, 1): broadcast over lanes (batch)
    b2c = jnp.asarray(b2).reshape(-1, 1)     # (45, 1)
    b3c = jnp.asarray(b3).reshape(1, 1)      # (1, 1)

    B, in_dim = x.shape
    out_dim1, out_dim2 = w1.shape[0], w2.shape[0]

    # Tile selection: always a multiple of 128 (lane-divisibility of the (1, tile_b)
    # output block and the (in_dim, tile_b) x block), shrink for tiny batches, and keep
    # >= 2 grid steps when the batch allows so v7x's 2 TensorCores both get work.
    tile_b = max(128, _round_up(int(tile_b), 128))
    B128 = _round_up(B, 128)
    if B128 < tile_b:
        tile_b = B128
    if B128 >= 256 and B128 // tile_b < 2:
        tile_b = min(tile_b, _round_up(pl.cdiv(B128, 2), 128))
    B_pad = _round_up(B, tile_b)
    num_tiles = B_pad // tile_b

    # Transpose once in the wrapper: feature-major x with contiguous per-row DMA.
    x_fm = x.T                               # (in_dim, B)
    if B_pad != B:
        x_fm = jnp.pad(x_fm, ((0, 0), (0, B_pad - B)))

    out = pl.pallas_call(
        discriminator_kernel,
        out_shape=jax.ShapeDtypeStruct((1, B_pad), jnp.float32),
        grid_spec=pltpu.PrefetchScalarGridSpec(
            num_scalar_prefetch=0,
            grid=(num_tiles,),
            in_specs=[
                pl.BlockSpec((in_dim, tile_b), lambda i: (0, i)),     # x: streamed over batch
                pl.BlockSpec((out_dim1, in_dim), lambda i: (0, 0)),   # w1: resident
                pl.BlockSpec((out_dim1, 1), lambda i: (0, 0)),        # b1: resident
                pl.BlockSpec((out_dim2, out_dim1), lambda i: (0, 0)), # w2: resident
                pl.BlockSpec((out_dim2, 1), lambda i: (0, 0)),        # b2: resident
                pl.BlockSpec((1, out_dim2), lambda i: (0, 0)),        # w3: resident
                pl.BlockSpec((1, 1), lambda i: (0, 0)),               # b3: resident
            ],
            out_specs=pl.BlockSpec((1, tile_b), lambda i: (0, i)),    # lane-dense output
        ),
        compiler_params=pltpu.CompilerParams(
            dimension_semantics=("parallel",),   # megacore / 2-TC sharding on v7x
            vmem_limit_bytes=32 * 1024 * 1024,   # tiny footprint; safe on v5e/v6e/v7x
        ),
    )(x_fm, w1, b1c, w2, b2c, w3, b3c)

    return out.reshape(B_pad, 1)[:B]


def init_params(key, input_dim=3):
    """Deterministic parameter init mirroring the PyTorch module's shapes.

    linear1/linear2 weights: kaiming_uniform (a=0, fan_in) -> U(-sqrt(6/fan_in), +sqrt(6/fan_in))
    biases + linear3: PyTorch default Linear init -> U(-1/sqrt(fan_in), +1/sqrt(fan_in))
    """
    ks = jax.random.split(key, 6)

    def kaiming_uniform(k, out_f, in_f):
        bound = jnp.sqrt(6.0 / in_f)
        return jax.random.uniform(k, (out_f, in_f), jnp.float32, -bound, bound)

    def default_uniform(k, shape, fan_in):
        bound = 1.0 / jnp.sqrt(float(fan_in))
        return jax.random.uniform(k, shape, jnp.float32, -bound, bound)

    w1 = kaiming_uniform(ks[0], 25, input_dim)
    b1 = default_uniform(ks[1], (1, 25), input_dim)
    w2 = kaiming_uniform(ks[2], 45, 25)
    b2 = default_uniform(ks[3], (1, 45), 25)
    w3 = default_uniform(ks[4], (1, 45), 45)
    b3 = default_uniform(ks[5], (1, 1), 45)
    return (w1, b1, w2, b2, w3, b3)


def reference_forward(x, params):
    w1, b1, w2, b2, w3, b3 = params
    h1 = jnp.maximum(x @ w1.T + b1, 0.0)
    h2 = jnp.maximum(h1 @ w2.T + b2, 0.0)
    return jax.nn.sigmoid(h2 @ w3.T + b3)


if __name__ == "__main__":
    key = jax.random.PRNGKey(0)
    k_x, k_p = jax.random.split(key)

    B, input_dim = 8, 3
    x = jax.random.normal(k_x, (B, input_dim), jnp.float32)
    params = init_params(k_p, input_dim=input_dim)

    out = discriminator_forward(x, params)
    out = jax.block_until_ready(out)

    ref = reference_forward(x, params)
    assert out.shape == (B, 1), out.shape
    assert jnp.allclose(out, ref, atol=1e-5, rtol=1e-5), (out, ref)

    # Also exercise the multi-tile / padded-batch path (>= 2 grid steps).
    B2 = 1000
    x2 = jax.random.normal(k_x, (B2, input_dim), jnp.float32)
    out2 = jax.block_until_ready(discriminator_forward(x2, params, tile_b=256))
    ref2 = reference_forward(x2, params)
    assert out2.shape == (B2, 1), out2.shape
    assert jnp.allclose(out2, ref2, atol=1e-5, rtol=1e-5)

    # Default large-tile path (single call, tile shrinks to the batch / splits in 2).
    B3 = 300
    x3 = jax.random.normal(k_x, (B3, input_dim), jnp.float32)
    out3 = jax.block_until_ready(discriminator_forward(x3, params))
    ref3 = reference_forward(x3, params)
    assert out3.shape == (B3, 1), out3.shape
    assert jnp.allclose(out3, ref3, atol=1e-5, rtol=1e-5)

    print("KERNEL_OK")
</pallas_src>

<mosaic_0001>
module attributes {stable_mosaic.version = 11 : i64} {
  func.func @discriminator_kernel(%arg0: i32, %arg1: memref<3x128xf32, #tpu.memory_space<vmem>>, %arg2: memref<25x3xf32, #tpu.memory_space<vmem>>, %arg3: memref<25x1xf32, #tpu.memory_space<vmem>>, %arg4: memref<45x25xf32, #tpu.memory_space<vmem>>, %arg5: memref<45x1xf32, #tpu.memory_space<vmem>>, %arg6: memref<1x45xf32, #tpu.memory_space<vmem>>, %arg7: memref<1x1xf32, #tpu.memory_space<vmem>>, %arg8: memref<1x128xf32, #tpu.memory_space<vmem>>) attributes {dimension_semantics = [#tpu.dimension_semantics<parallel>], iteration_bounds = array<i64: 1>, scalar_prefetch = 0 : i64, scratch_operands = 0 : i64, tpu.core_type = #tpu.core_type<tc>, window_params = [{transform_indices = @transform_0, window_bounds = array<i64: 3, 128>}, {pipeline_mode = #tpu.pipeline_mode<synchronous>, transform_indices = @transform_1, window_bounds = array<i64: 25, 3>}, {pipeline_mode = #tpu.pipeline_mode<synchronous>, transform_indices = @transform_2, window_bounds = array<i64: 25, 1>}, {pipeline_mode = #tpu.pipeline_mode<synchronous>, transform_indices = @transform_3, window_bounds = array<i64: 45, 25>}, {pipeline_mode = #tpu.pipeline_mode<synchronous>, transform_indices = @transform_4, window_bounds = array<i64: 45, 1>}, {pipeline_mode = #tpu.pipeline_mode<synchronous>, transform_indices = @transform_5, window_bounds = array<i64: 1, 45>}, {pipeline_mode = #tpu.pipeline_mode<synchronous>, transform_indices = @transform_6, window_bounds = array<i64: 1, 1>}, {transform_indices = @transform_7, window_bounds = array<i64: 1, 128>}]} {
    %c0 = arith.constant 0 : index
    %c0_0 = arith.constant 0 : index
    %0 = vector.load %arg1[%c0, %c0_0] : memref<3x128xf32, #tpu.memory_space<vmem>>, vector<3x128xf32>
    %c0_1 = arith.constant 0 : index
    %c0_2 = arith.constant 0 : index
    %1 = vector.load %arg2[%c0_1, %c0_2] : memref<25x3xf32, #tpu.memory_space<vmem>>, vector<25x3xf32>
    %cst = arith.constant dense<0.000000e+00> : vector<25x128xf32>
    %2 = tpu.matmul %1, %0, %cst {dimension_numbers = #tpu.dot_dimension_numbers<[1], [0], [0], [1], [0, 0, 1, 1], [], []>} : vector<25x3xf32>, vector<3x128xf32>, vector<25x128xf32> -> vector<25x128xf32>
    %c0_3 = arith.constant 0 : index
    %c0_4 = arith.constant 0 : index
    %3 = vector.load %arg3[%c0_3, %c0_4] : memref<25x1xf32, #tpu.memory_space<vmem>>, vector<25x1xf32>
    %4 = vector.broadcast %3 : vector<25x1xf32> to vector<25x128xf32>
    %5 = arith.addf %2, %4 : vector<25x128xf32>
    %cst_5 = arith.constant 0.000000e+00 : f32
    %6 = vector.broadcast %cst_5 : f32 to vector<25x128xf32>
    %7 = arith.maximumf %5, %6 : vector<25x128xf32>
    %c0_6 = arith.constant 0 : index
    %c0_7 = arith.constant 0 : index
    %8 = vector.load %arg4[%c0_6, %c0_7] : memref<45x25xf32, #tpu.memory_space<vmem>>, vector<45x25xf32>
    %cst_8 = arith.constant dense<0.000000e+00> : vector<45x128xf32>
    %9 = tpu.matmul %8, %7, %cst_8 {dimension_numbers = #tpu.dot_dimension_numbers<[1], [0], [0], [1], [0, 0, 1, 1], [], []>} : vector<45x25xf32>, vector<25x128xf32>, vector<45x128xf32> -> vector<45x128xf32>
    %c0_9 = arith.constant 0 : index
    %c0_10 = arith.constant 0 : index
    %10 = vector.load %arg5[%c0_9, %c0_10] : memref<45x1xf32, #tpu.memory_space<vmem>>, vector<45x1xf32>
    %11 = vector.broadcast %10 : vector<45x1xf32> to vector<45x128xf32>
    %12 = arith.addf %9, %11 : vector<45x128xf32>
    %cst_11 = arith.constant 0.000000e+00 : f32
    %13 = vector.broadcast %cst_11 : f32 to vector<45x128xf32>
    %14 = arith.maximumf %12, %13 : vector<45x128xf32>
    %c0_12 = arith.constant 0 : index
    %c0_13 = arith.constant 0 : index
    %15 = vector.load %arg6[%c0_12, %c0_13] : memref<1x45xf32, #tpu.memory_space<vmem>>, vector<1x45xf32>
    %cst_14 = arith.constant dense<0.000000e+00> : vector<1x128xf32>
    %16 = tpu.matmul %15, %14, %cst_14 {dimension_numbers = #tpu.dot_dimension_numbers<[1], [0], [0], [1], [0, 0, 1, 1], [], []>} : vector<1x45xf32>, vector<45x128xf32>, vector<1x128xf32> -> vector<1x128xf32>
    %c0_15 = arith.constant 0 : index
    %c0_16 = arith.constant 0 : index
    %17 = vector.load %arg7[%c0_15, %c0_16] : memref<1x1xf32, #tpu.memory_space<vmem>>, vector<1x1xf32>
    %18 = vector.broadcast %17 : vector<1x1xf32> to vector<1x128xf32>
    %19 = arith.addf %16, %18 : vector<1x128xf32>
    %20 = arith.negf %19 : vector<1x128xf32>
    %21 = math.exp %20 : vector<1x128xf32>
    %cst_17 = arith.constant 1.000000e+00 : f32
    %22 = vector.broadcast %cst_17 : f32 to vector<1x128xf32>
    %23 = arith.addf %22, %21 : vector<1x128xf32>
    %24 = arith.divf %22, %23 : vector<1x128xf32>
    %c0_18 = arith.constant 0 : index
    %c0_19 = arith.constant 0 : index
    %25 = vector.load %arg8[%c0_18, %c0_19] : memref<1x128xf32, #tpu.memory_space<vmem>>, vector<1x128xf32>
    tpu.vector_store %arg8[%c0_18, %c0_19], %24 {strides = array<i32>} : memref<1x128xf32, #tpu.memory_space<vmem>>, vector<1x128xf32>,
    return
  }
  func.func @transform_0(%arg0: i32) -> (i32, i32) {
    %c0_i32 = arith.constant 0 : i32
    %c0_i32_0 = arith.constant 0 : i32
    return %c0_i32, %arg0 : i32, i32
  }
  func.func @transform_1(%arg0: i32) -> (i32, i32) {
    %c0_i32 = arith.constant 0 : i32
    %c0_i32_0 = arith.constant 0 : i32
    %c0_i32_1 = arith.constant 0 : i32
    return %c0_i32, %c0_i32_0 : i32, i32
  }
  func.func @transform_2(%arg0: i32) -> (i32, i32) {
    %c0_i32 = arith.constant 0 : i32
    %c0_i32_0 = arith.constant 0 : i32
    %c0_i32_1 = arith.constant 0 : i32
    return %c0_i32, %c0_i32_0 : i32, i32
  }
  func.func @transform_3(%arg0: i32) -> (i32, i32) {
    %c0_i32 = arith.constant 0 : i32
    %c0_i32_0 = arith.constant 0 : i32
    %c0_i32_1 = arith.constant 0 : i32
    return %c0_i32, %c0_i32_0 : i32, i32
  }
  func.func @transform_4(%arg0: i32) -> (i32, i32) {
    %c0_i32 = arith.constant 0 : i32
    %c0_i32_0 = arith.constant 0 : i32
    %c0_i32_1 = arith.constant 0 : i32
    return %c0_i32, %c0_i32_0 : i32, i32
  }
  func.func @transform_5(%arg0: i32) -> (i32, i32) {
    %c0_i32 = arith.constant 0 : i32
    %c0_i32_0 = arith.constant 0 : i32
    %c0_i32_1 = arith.constant 0 : i32
    return %c0_i32, %c0_i32_0 : i32, i32
  }
  func.func @transform_6(%arg0: i32) -> (i32, i32) {
    %c0_i32 = arith.constant 0 : i32
    %c0_i32_0 = arith.constant 0 : i32
    %c0_i32_1 = arith.constant 0 : i32
    return %c0_i32, %c0_i32_0 : i32, i32
  }
  func.func @transform_7(%arg0: i32) -> (i32, i32) {
    %c0_i32 = arith.constant 0 : i32
    %c0_i32_0 = arith.constant 0 : i32
    return %c0_i32, %arg0 : i32, i32
  }
}

</mosaic_0001>

<bundles_post_ra>
// kernel: tpu_custom_call.1
= control target key start
LH: loop header
LB: loop body
LE: loop exit
PB: predicated region body
PF: predicated region fallthrough
CT: control target
= control target key end

     0   :  { %s675_s0 = inlined_call_operand.vmem [shape: f32[3,128], index: 0, kind: input, shape index: {}]   ;;  %s676_s1 = inlined_call_operand.vmem [shape: f32[25,3], index: 1, kind: input, shape index: {}]   ;;  %s677_s2 = inlined_call_operand.vmem [shape: f32[25,1], index: 2, kind: input, shape index: {}]   ;;  %s678_s3 = inlined_call_operand.vmem [shape: f32[45,25], index: 3, kind: input, shape index: {}]   ;;  %s679_s4 = inlined_call_operand.vmem [shape: f32[45,1], index: 4, kind: input, shape index: {}]   ;;  %s680_s5 = inlined_call_operand.vmem [shape: f32[1,45], index: 5, kind: input, shape index: {}]   ;;  %s681_s6 = inlined_call_operand.<no memory space> [shape: f32[1,1], index: 6, kind: input, shape index: {}]   ;;  %s682_s7 = inlined_call_operand.hbm [shape: f32[1,128], index: 7, kind: output, shape index: {}]  }
   0x1   :  { %v12_v0 = vstv %s681_s6 }
   0x2   :  { %13 = vst [vmem:[#allocation2] sm:$0x1] %v12_v0 }
   0x3   :  { %v29_v1 = vld [vmem:[%s675_s0] sm:$0x7]  ;;  %vm71_vm0 = vcmask 1042432   ;;  %vm58_vm1 = vcmask 23552   ;;  %v31_v3 = vld [vmem:[%s676_s1 + $0x8] sm:$0xff]  ;;  %v32_v4 = vld [vmem:[%s676_s1 + $0x10] sm:$0xff] }
   0x4   :  { %v30_v2 = vld [vmem:[%s676_s1] sm:$0xff]  ;;  %477 = vmatprep.subr.msk.mxu0 %vm71_vm0, %v29_v1  ;;  %v37_v5 = vld [vmem:[%s677_s2 + $0x18] sm:$0x1]  ;;  %v549_v6 = vmov 0   ;;  %v35_v7 = vld [vmem:[%s677_s2 + $0x8] sm:$0xff] }
   0x5   :  { %479 = vmatprep.mubr.msk.f32.mxu0 %vm58_vm1, %v30_v2  ;;  %478 = vmatpush3.msk.msra.mxu0 %vm71_vm0, %v29_v1  ;;  %v33_v8 = vld [vmem:[%s676_s1 + $0x18] sm:$0x1]  ;;  %v36_v9 = vld [vmem:[%s677_s2 + $0x10] sm:$0xff] }
   0x6   :  { %521 = vset.pattern.permute.xlu0 %v549_v6  ;;  %480 = vmatmul.mubr.msk.f32.vlgmr.msra.gmra.mxu0 %vm58_vm1, %v31_v3 }
   0x7   :  { %55 = vperm.xlu0 %521, %v37_v5   ;;  %482 = vmatprep.mubr.msk.f32.mxu0 %vm58_vm1, %v32_v4 }
   0x8   :  { %522 = vset.pattern.permute.xlu1 %v549_v6 }
   0x9   :  { %45 = vperm.xlu1 %522, %v35_v7  }
   0xa   :  { %14 = vsyncpa [#allocation4], 0  ;;  %v34_v10 = vld [vmem:[%s677_s2] sm:$0xff]  ;;  %483 = vmatmul.mubr.msk.f32.gmra.mxu0 %vm58_vm1, %v33_v8  ;;  %v175_v11 = vld [vmem:[%s679_s4 + $0x28] sm:$0x1f]  ;;  %vm206_vm2 = vcmask 203776   ;;  %v337_v2 = vlaneseq }
   0xb   :  { %50 = vperm.xlu0 %521, %v36_v9   ;;  %v174_v12 = vld [vmem:[%s679_s4 + $0x20] sm:$0xff]  ;;  %v173_v13 = vld [vmem:[%s679_s4 + $0x18] sm:$0xff]  ;;  %v172_v14 = vld [vmem:[%s679_s4 + $0x10] sm:$0xff]  ;;  %vm225_vm3 = vcmask 1040384   ;;  %v550_v40 = vmov 0.0   ;;  %vm551_vm4 = vmmov 0  }
   0xc   :  { %v171_v15 = vld [vmem:[%s679_s4 + $0x8] sm:$0xff]  ;;  %v170_v16 = vld [vmem:[%s679_s4] sm:$0xff]  ;;  %v166_v36 = vld [vmem:[%s678_s3 + $0x10] sm:$0xff]  ;;  %502 = vmatprep.subr.mxu0 %v550_v40  ;;  %514 = vmatprep.mubr.msk.f32.mxu0 %vm551_vm4, %v550_v40  ;;  %vm345_vm5 = vcmask 1044480   ;;  %vm341_vm6 = vcmask 367616   ;;  %v338_v3 = vshrl.u32 %v337_v2, 7 }
   0xd   :  { %40 = vperm.xlu1 %522, %v34_v10   ;;  %v331_v17 = vld [vmem:[#allocation2] sm:$0x1]  ;;  %v165_v35 = vld [vmem:[%s678_s3 + $0x8] sm:$0xff]  ;;  %v167_v37 = vld [vmem:[%s678_s3 + $0x18] sm:$0xff]  ;;  %s552_s16 = smov [#allocation3]  }
   0xe   :  { %v164_v18 = vld [vmem:[%s678_s3] sm:$0xff]  ;;  %v169_v39 = vld [vmem:[%s678_s3 + $0x28] sm:$0x1f]  ;;  %v339_v4 = vsub.s32 0, %v338_v3  ;;  %s432_s17 = sshll.u32 %s552_s16, 4  ;;  %s433_s17 = int_to_ptr.vmem [resolvable:$true] %s432_s17 }
   0xf   :  { %203 = vperm.xlu0 %521, %v175_v11   ;;  %493 = vmatprep.mubr.msk.f32.mxu1 %vm206_vm2, %v164_v18  ;;  %v168_v38 = vld [vmem:[%s678_s3 + $0x20] sm:$0xff]  ;;  %s531_s18 = scalar_lea.vmem %s433_s17, 32  ;;  %p532_p1 = scmp.lt.s32.totalorder %s433_s17, %s433_s17 }
  0x10   :  { %v330_v1 = vld [vmem:[%s680_s5] sm:$0x1]  ;;  %s527_s5 = scalar_lea.vmem %s433_s17, 16 }
  0x11   :  { %198 = vperm.xlu1 %522, %v174_v12   ;;  %p528_p0 = scmp.ne.s32.totalorder %s433_s17, %s527_s5  ;;  %p533_p2 = scmp.lt.s32.totalorder %s531_s18, %s527_s5 }
  0x13   :  { %193 = vperm.xlu0 %521, %v173_v13   ;;  %p534_p3 = por %p533_p2, %p532_p1 }
  0x15   :  { %188 = vperm.xlu1 %522, %v172_v14   ;;  %p535_p4 = pnand %p534_p3, %p528_p0 }
  0x17   :  { %183 = vperm.xlu0 %521, %v171_v15  }
  0x19   :  { %178 = vperm.xlu1 %522, %v170_v16  }
  0x1b   :  { %334 = vperm.xlu0 %521, %v331_v17  }
  0x82   :  { %v56_v19 = vpop.permute.xlu0 %55 }
  0x84   :  { %v46_v21 = vpop.permute.xlu1 %45 }
  0x86   :  { %v51_v25 = vpop.permute.xlu0 %50 }
  0x88   :  { %v41_v30 = vpop.permute.xlu1 %40 }
  0x8a   :  { %v204_v42 = vpop.permute.xlu0 %203 }
  0x8c   :  { %v199_v44 = vpop.permute.xlu1 %198 }
  0x8e   :  { %v194_v47 = vpop.permute.xlu0 %193 }
  0x90   :  { %v189_v50 = vpop.permute.xlu1 %188 }
  0x92   :  { %v184_v57 = vpop.permute.xlu0 %183 }
  0x94   :  { %v179_v60 = vpop.permute.xlu1 %178 }
  0x96   :  { %v335_v5 = vpop.permute.xlu0 %334 }
  0x97   :  { %v340_v6 = vrot.slane %v335_v5, %v339_v4 }
  0xc6   :  { %v481_v20 = vpop.f32.mrf.mxu0 }
  0xc7   :  { %v147_v27 = vadd.f32 %v481_v20, %v46_v21 }
  0xc8   :  { %v141_v22 = vpop.f32.mrf.mxu0 }
  0xc9   :  { %v142_v31 = vadd.f32 %v141_v22, %v41_v30  ;;  %v161_v33 = vmax.f32 %v147_v27, 0.0 }
  0xca   :  { %v484_v23 = vpop.f32.mrf.mxu0 }
  0xcb   :  { %v157_v24 = vadd.f32 %v484_v23, %v56_v19  ;;  %v160_v34 = vmax.f32 %v142_v31, 0.0 }
  0xcc   :  { %v151_v26 = vpop.f32.mrf.mxu0 }
  0xcd   :  { %v163_v28 = vmax.f32 %v157_v24, 0.0  ;;  %v152_v29 = vadd.f32 %v151_v26, %v51_v25 }
  0xcf   :  { %v162_v32 = vmax.f32 %v152_v29, 0.0  ;;  %485 = vmatprep.subr.msk.mxu1 %vm225_vm3, %v163_v28 }
  0xd0   :  { %486 = vmatpush3.msk.msra.mxu1 %vm225_vm3, %v163_v28 }
  0xd1   :  { %487 = vmatprep.subr.mxu1 %v162_v32 }
  0xd2   :  { %488 = vmatpush3.msra.mxu1 %v162_v32 }
  0xd3   :  { %489 = vmatprep.subr.mxu1 %v161_v33 }
  0xd4   :  { %490 = vmatpush3.msra.mxu1 %v161_v33 }
  0xd5   :  { %491 = vmatprep.subr.mxu1 %v160_v34 }
  0xd6   :  { %492 = vmatpush3.msra.mxu1 %v160_v34 }
  0xd7   :  { %494 = vmatmul.mubr.msk.f32.vlgmr.msra.gmra.mxu1 %vm206_vm2, %v165_v35 }
  0xd8   :  { %496 = vmatprep.mubr.msk.f32.mxu1 %vm206_vm2, %v166_v36 }
  0xdb   :  { %497 = vmatmul.mubr.msk.f32.gmra.mxu1 %vm206_vm2, %v167_v37 }
  0xdc   :  { %499 = vmatprep.mubr.msk.f32.mxu1 %vm206_vm2, %v168_v38 }
  0xdf   :  { %500 = vmatmul.mubr.msk.f32.gmra.mxu1 %vm206_vm2, %v169_v39 }
 0x197   :  { %v495_v41 = vpop.f32.mrf.mxu1 }
 0x198   :  { %v301_v58 = vadd.f32 %v495_v41, %v184_v57 }
 0x199   :  { %v295_v43 = vpop.f32.mrf.mxu1 }
 0x19a   :  { %v296_v61 = vadd.f32 %v295_v43, %v179_v60  ;;  %v325_v63 = vmax.f32 %v301_v58, 0.0 }
 0x19b   :  { %v498_v45 = vpop.f32.mrf.mxu1 }
 0x19c   :  { %v311_v52 = vadd.f32 %v498_v45, %v194_v47  ;;  %v324_v0 = vmax.f32 %v296_v61, 0.0 }
 0x19d   :  { %v305_v46 = vpop.f32.mrf.mxu1 }
 0x19e   :  { %v306_v55 = vadd.f32 %v305_v46, %v189_v50  ;;  %v327_v59 = vmax.f32 %v311_v52, 0.0 }
 0x19f   :  { %v501_v48 = vpop.f32.mrf.mxu1 }
 0x1a0   :  { %v321_v49 = vadd.f32 %v501_v48, %v204_v42  ;;  %v326_v62 = vmax.f32 %v306_v55, 0.0 }
 0x1a1   :  { %v315_v51 = vpop.f32.mrf.mxu1 }
 0x1a2   :  { %v329_v53 = vmax.f32 %v321_v49, 0.0  ;;  %v316_v54 = vadd.f32 %v315_v51, %v199_v44 }
 0x1a4   :  { %v328_v56 = vmax.f32 %v316_v54, 0.0  ;;  %503 = vmatpush3.msk.msra.mxu0 %vm345_vm5, %v329_v53 }
 0x1a5   :  { %504 = vmatprep.subr.mxu0 %v550_v40 }
 0x1a6   :  { %505 = vmatpush3.msra.mxu0 %v328_v56 }
 0x1a7   :  { %506 = vmatprep.subr.mxu0 %v550_v40 }
 0x1a8   :  { %507 = vmatpush3.msra.mxu0 %v327_v59 }
 0x1a9   :  { %508 = vmatprep.subr.mxu0 %v550_v40 }
 0x1aa   :  { %509 = vmatpush3.msra.mxu0 %v326_v62 }
 0x1ab   :  { %510 = vmatprep.subr.mxu0 %v550_v40 }
 0x1ac   :  { %511 = vmatpush3.msra.mxu0 %v325_v63 }
 0x1ad   :  { %512 = vmatprep.subr.mxu0 %v550_v40 }
 0x1ae   :  { %513 = vmatpush3.msra.mxu0 %v324_v0 }
 0x1af   :  { %515 = vmatmul.mubr.msk.f32.vlgmr.msra.gmra.mxu0 %vm341_vm6, %v330_v1 }
 0x26f   :  { %v415_v7 = vpop.f32.mrf.mxu0 }
 0x270   :  { %v416_v8 = vadd.f32 %v415_v7, %v340_v6 }
 0x271   :  { %v516_v9 = vpop.f32.mrf.mxu0 }
 0x272   :  { %v454_v10 = vmul.f32 -1.442695, %v416_v8 }
 0x274   :  { %523 = vpow2.f32 %v454_v10 }
 0x281   :  { %v524_v11 = vpop.eup %523 }
 0x282   :  { %v422_v12 = vadd.f32 1.0, %v524_v11 }
 0x284   :  { %525 = vrcp.f32 %v422_v12 }
 0x291   :  { %v526_v13 = vpop.eup %525 }
 0x292   :  { %425 = vst [vmem:[#allocation3] sm:$0x1] %v526_v13 }
 0x293   :  { %538 = shalt.err (!%p535_p4)
}
 0x294   :  { %435 = dma.vmem_to_hbm [thread:$0]  %s433_s17, 16, %s682_s7, [#allocation4]  }
 0x295   :  { %547 = dma.done.wait [#allocation4], 16  }
 0x296   :  { %548 = vsyncadd [#allocation4], 4294967280 }
 0x297   :  { %439 = vsyncpa [#allocation4], 1 }

</bundles_post_ra>
